<compile_context>
chip_gen: v7x
topology: tpu7x:2x2x1
jax: 0.10.0
libtpu: 0.0.40
codegen_flags: <defaults>
</compile_context>

<pallas_src>
import functools

import jax
import jax.numpy as jnp
from jax import lax
from jax.experimental import pallas as pl
from jax.experimental.pallas import tpu as pltpu


_VMEM_LIMIT = 48 * 1024 * 1024  # explicit scoped-VMEM budget, headroom vs v7x 64 MiB


def _pick_row_tile(m: int, max_tile: int = 256) -> int:
    """Largest tile <= max_tile that divides m; full extent if m is small."""
    if m <= max_tile:
        return m                       # full-extent block is always legal
    for t in range(max_tile, 7, -8):   # multiple-of-8 candidates (sublane align)
        if m % t == 0:
            return t
    return m                           # fallback: single block


# ---------------------------------------------------------------------------
# Kernel 1: fused QKV projection over the batch-flattened token axis.
#   x2d: (B*S, D), w3: (3, D, D)  ->  q, k, v: (B*S, D) bf16
# The softmax scale is folded into q here.
# ---------------------------------------------------------------------------
def _qkv_kernel(x_ref, w_ref, q_ref, k_ref, v_ref, *, scale: float):
    x = x_ref[...].astype(jnp.bfloat16)           # (tm, D)
    wq = w_ref[0].astype(jnp.bfloat16)            # (D, D)
    wk = w_ref[1].astype(jnp.bfloat16)
    wv = w_ref[2].astype(jnp.bfloat16)

    q = jnp.dot(x, wq, preferred_element_type=jnp.float32) * scale
    k = jnp.dot(x, wk, preferred_element_type=jnp.float32)
    v = jnp.dot(x, wv, preferred_element_type=jnp.float32)

    q_ref[...] = q.astype(q_ref.dtype)
    k_ref[...] = k.astype(k_ref.dtype)
    v_ref[...] = v.astype(v_ref.dtype)


def _qkv_project(x2d: jax.Array, w3: jax.Array, scale: float):
    M, D = x2d.shape
    tm = _pick_row_tile(M)
    out = jax.ShapeDtypeStruct((M, D), jnp.bfloat16)
    # TODO(synk): for production D (>= ~1024) the resident (3, D, D) weight no
    # longer fits VMEM; tile the projection over the output/K dims with an
    # accumulator instead of a single full-weight block.
    return pl.pallas_call(
        functools.partial(_qkv_kernel, scale=scale),
        out_shape=(out, out, out),
        grid_spec=pltpu.PrefetchScalarGridSpec(
            num_scalar_prefetch=0,
            grid=(M // tm,),
            in_specs=[
                pl.BlockSpec((tm, D), lambda i: (i, 0)),        # x tile
                pl.BlockSpec((3, D, D), lambda i: (0, 0, 0)),   # full weight
            ],
            out_specs=[
                pl.BlockSpec((tm, D), lambda i: (i, 0)),
                pl.BlockSpec((tm, D), lambda i: (i, 0)),
                pl.BlockSpec((tm, D), lambda i: (i, 0)),
            ],
        ),
        compiler_params=pltpu.CompilerParams(
            dimension_semantics=("parallel",),
            vmem_limit_bytes=_VMEM_LIMIT,
        ),
    )(x2d, w3)


# ---------------------------------------------------------------------------
# Kernel 2: attention core.  q is pre-scaled bf16; k, v are bf16.
# Grid: (batch, query-tile), both parallel; KV for one batch element stays
# resident per step.
# ---------------------------------------------------------------------------
def _attn_core_kernel(q_ref, k_ref, v_ref, o_ref):
    q = q_ref[0]                                   # (tq, D) bf16, pre-scaled
    k = k_ref[0]                                   # (S, D)  bf16
    v = v_ref[0]                                   # (S, D)  bf16

    # Contract over the feature dim directly -- no k.T / XLU transpose.
    s = lax.dot_general(q, k, (((1,), (1,)), ((), ())),
                        preferred_element_type=jnp.float32)     # (tq, S) f32

    # Numerically stable softmax in f32; divide via EUP approx reciprocal.
    s = s - jnp.max(s, axis=-1, keepdims=True)
    p = jnp.exp(s)
    p = p * pl.reciprocal(jnp.sum(p, axis=-1, keepdims=True), approx=True)

    out = jnp.dot(p.astype(jnp.bfloat16), v,
                  preferred_element_type=jnp.float32)           # (tq, D) f32
    o_ref[0] = out.astype(o_ref.dtype)


def _attention_core(q: jax.Array, k: jax.Array, v: jax.Array, out_dtype):
    B, S, D = q.shape
    tq = _pick_row_tile(S)
    # TODO(synk): for long sequences (S*S f32 scores near the VMEM limit,
    # especially v7x's 64 MiB) switch to flash-style KV tiling + online softmax.
    return pl.pallas_call(
        _attn_core_kernel,
        out_shape=jax.ShapeDtypeStruct((B, S, D), out_dtype),
        grid_spec=pltpu.PrefetchScalarGridSpec(
            num_scalar_prefetch=0,
            grid=(B, S // tq),
            in_specs=[
                pl.BlockSpec((1, tq, D), lambda b, i: (b, i, 0)),  # q tile
                pl.BlockSpec((1, S, D), lambda b, i: (b, 0, 0)),   # full K
                pl.BlockSpec((1, S, D), lambda b, i: (b, 0, 0)),   # full V
            ],
            out_specs=pl.BlockSpec((1, tq, D), lambda b, i: (b, i, 0)),
        ),
        compiler_params=pltpu.CompilerParams(
            dimension_semantics=("parallel", "parallel"),
            vmem_limit_bytes=_VMEM_LIMIT,
        ),
    )(q, k, v)


def attention(x: jax.Array, w3: jax.Array) -> jax.Array:
    """x: [B, S, D] f32.  w3: [3, D, D] where w3[i] is the i-th D x D
    projection applied as x @ w3[i] (i.e. torch to_qkv.weight[i*D:(i+1)*D].T).
    Returns softmax(q k^T / sqrt(D)) v, matching Attention.forward."""
    B, S, D = x.shape
    assert w3.shape == (3, D, D)
    scale = float(D) ** -0.5

    q2, k2, v2 = _qkv_project(x.reshape(B * S, D), w3, scale)
    q = q2.reshape(B, S, D)
    k = k2.reshape(B, S, D)
    v = v2.reshape(B, S, D)
    return _attention_core(q, k, v, x.dtype)


def attention_ref(x: jax.Array, w3: jax.Array) -> jax.Array:
    """Pure-JAX f32 reference matching the PyTorch forward."""
    D = x.shape[-1]
    q = jnp.einsum("bsd,de->bse", x, w3[0])
    k = jnp.einsum("bsd,de->bse", x, w3[1])
    v = jnp.einsum("bsd,de->bse", x, w3[2])
    attn = jnp.einsum("bqd,bkd->bqk", q, k) * (float(D) ** -0.5)
    attn = jax.nn.softmax(attn, axis=-1)
    return jnp.einsum("bqk,bkd->bqd", attn, v)


if __name__ == "__main__":
    B, S, D = 2, 8, 32

    key = jax.random.PRNGKey(0)
    kx, kw = jax.random.split(key)

    x = jax.random.normal(kx, (B, S, D), dtype=jnp.float32)
    # PyTorch Linear(dim, 3*dim, bias=False) init range, stored as (3, D, D)
    # with each slice pre-transposed so the kernel does x @ w3[i].
    bound = 1.0 / (D ** 0.5)
    w3 = jax.random.uniform(kw, (3, D, D), dtype=jnp.float32,
                            minval=-bound, maxval=bound)

    out = jax.block_until_ready(attention(x, w3))
    ref = attention_ref(x, w3)

    assert out.shape == (B, S, D)
    # bf16 MXU operands with f32 accumulation: loosen tolerance vs f32 ref.
    assert jnp.allclose(out, ref, atol=3e-2, rtol=3e-2), "mismatch vs reference"

    print("KERNEL_OK")
</pallas_src>

<mosaic_0001>
module attributes {stable_mosaic.version = 11 : i64} {
  func.func @_qkv_kernel(%arg0: i32, %arg1: memref<16x32xf32, #tpu.memory_space<vmem>>, %arg2: memref<3x32x32xf32, #tpu.memory_space<vmem>>, %arg3: memref<16x32xbf16, #tpu.memory_space<vmem>>, %arg4: memref<16x32xbf16, #tpu.memory_space<vmem>>, %arg5: memref<16x32xbf16, #tpu.memory_space<vmem>>) attributes {dimension_semantics = [#tpu.dimension_semantics<parallel>], iteration_bounds = array<i64: 1>, scalar_prefetch = 0 : i64, scratch_operands = 0 : i64, tpu.core_type = #tpu.core_type<tc>, window_params = [{transform_indices = @transform_0, window_bounds = array<i64: 16, 32>}, {pipeline_mode = #tpu.pipeline_mode<synchronous>, transform_indices = @transform_1, window_bounds = array<i64: 3, 32, 32>}, {transform_indices = @transform_2, window_bounds = array<i64: 16, 32>}, {transform_indices = @transform_3, window_bounds = array<i64: 16, 32>}, {transform_indices = @transform_4, window_bounds = array<i64: 16, 32>}]} {
    %c0 = arith.constant 0 : index
    %c0_0 = arith.constant 0 : index
    %0 = vector.load %arg1[%c0, %c0_0] : memref<16x32xf32, #tpu.memory_space<vmem>>, vector<16x32xf32>
    %1 = arith.truncf %0 : vector<16x32xf32> to vector<16x32xbf16>
    %c0_1 = arith.constant 0 : index
    %c0_2 = arith.constant 0 : index
    %c0_3 = arith.constant 0 : index
    %2 = vector.load %arg2[%c0_1, %c0_2, %c0_3] : memref<3x32x32xf32, #tpu.memory_space<vmem>>, vector<1x32x32xf32>
    %3 = vector.shape_cast %2 : vector<1x32x32xf32> to vector<32x32xf32>
    %4 = arith.truncf %3 : vector<32x32xf32> to vector<32x32xbf16>
    %c1 = arith.constant 1 : index
    %c0_4 = arith.constant 0 : index
    %c0_5 = arith.constant 0 : index
    %5 = vector.load %arg2[%c1, %c0_4, %c0_5] : memref<3x32x32xf32, #tpu.memory_space<vmem>>, vector<1x32x32xf32>
    %6 = vector.shape_cast %5 : vector<1x32x32xf32> to vector<32x32xf32>
    %7 = arith.truncf %6 : vector<32x32xf32> to vector<32x32xbf16>
    %c2 = arith.constant 2 : index
    %c0_6 = arith.constant 0 : index
    %c0_7 = arith.constant 0 : index
    %8 = vector.load %arg2[%c2, %c0_6, %c0_7] : memref<3x32x32xf32, #tpu.memory_space<vmem>>, vector<1x32x32xf32>
    %9 = vector.shape_cast %8 : vector<1x32x32xf32> to vector<32x32xf32>
    %10 = arith.truncf %9 : vector<32x32xf32> to vector<32x32xbf16>
    %cst = arith.constant dense<0.000000e+00> : vector<16x32xf32>
    %11 = tpu.matmul %1, %4, %cst {dimension_numbers = #tpu.dot_dimension_numbers<[1], [0], [0], [1], [0, 0, 1, 1], [], []>} : vector<16x32xbf16>, vector<32x32xbf16>, vector<16x32xf32> -> vector<16x32xf32>
    %cst_8 = arith.constant 0.176776692 : f32
    %12 = vector.broadcast %cst_8 : f32 to vector<16x32xf32>
    %13 = arith.mulf %11, %12 : vector<16x32xf32>
    %cst_9 = arith.constant dense<0.000000e+00> : vector<16x32xf32>
    %14 = tpu.matmul %1, %7, %cst_9 {dimension_numbers = #tpu.dot_dimension_numbers<[1], [0], [0], [1], [0, 0, 1, 1], [], []>} : vector<16x32xbf16>, vector<32x32xbf16>, vector<16x32xf32> -> vector<16x32xf32>
    %cst_10 = arith.constant dense<0.000000e+00> : vector<16x32xf32>
    %15 = tpu.matmul %1, %10, %cst_10 {dimension_numbers = #tpu.dot_dimension_numbers<[1], [0], [0], [1], [0, 0, 1, 1], [], []>} : vector<16x32xbf16>, vector<32x32xbf16>, vector<16x32xf32> -> vector<16x32xf32>
    %16 = arith.truncf %13 : vector<16x32xf32> to vector<16x32xbf16>
    %c0_11 = arith.constant 0 : index
    %c0_12 = arith.constant 0 : index
    %17 = vector.load %arg3[%c0_11, %c0_12] : memref<16x32xbf16, #tpu.memory_space<vmem>>, vector<16x32xbf16>
    tpu.vector_store %arg3[%c0_11, %c0_12], %16 {strides = array<i32>} : memref<16x32xbf16, #tpu.memory_space<vmem>>, vector<16x32xbf16>,
    %18 = arith.truncf %14 : vector<16x32xf32> to vector<16x32xbf16>
    %c0_13 = arith.constant 0 : index
    %c0_14 = arith.constant 0 : index
    %19 = vector.load %arg4[%c0_13, %c0_14] : memref<16x32xbf16, #tpu.memory_space<vmem>>, vector<16x32xbf16>
    tpu.vector_store %arg4[%c0_13, %c0_14], %18 {strides = array<i32>} : memref<16x32xbf16, #tpu.memory_space<vmem>>, vector<16x32xbf16>,
    %20 = arith.truncf %15 : vector<16x32xf32> to vector<16x32xbf16>
    %c0_15 = arith.constant 0 : index
    %c0_16 = arith.constant 0 : index
    %21 = vector.load %arg5[%c0_15, %c0_16] : memref<16x32xbf16, #tpu.memory_space<vmem>>, vector<16x32xbf16>
    tpu.vector_store %arg5[%c0_15, %c0_16], %20 {strides = array<i32>} : memref<16x32xbf16, #tpu.memory_space<vmem>>, vector<16x32xbf16>,
    return
  }
  func.func @transform_0(%arg0: i32) -> (i32, i32) {
    %c0_i32 = arith.constant 0 : i32
    %c0_i32_0 = arith.constant 0 : i32
    return %arg0, %c0_i32 : i32, i32
  }
  func.func @transform_1(%arg0: i32) -> (i32, i32, i32) {
    %c0_i32 = arith.constant 0 : i32
    %c0_i32_0 = arith.constant 0 : i32
    %c0_i32_1 = arith.constant 0 : i32
    %c0_i32_2 = arith.constant 0 : i32
    return %c0_i32, %c0_i32_0, %c0_i32_1 : i32, i32, i32
  }
  func.func @transform_2(%arg0: i32) -> (i32, i32) {
    %c0_i32 = arith.constant 0 : i32
    %c0_i32_0 = arith.constant 0 : i32
    return %arg0, %c0_i32 : i32, i32
  }
  func.func @transform_3(%arg0: i32) -> (i32, i32) {
    %c0_i32 = arith.constant 0 : i32
    %c0_i32_0 = arith.constant 0 : i32
    return %arg0, %c0_i32 : i32, i32
  }
  func.func @transform_4(%arg0: i32) -> (i32, i32) {
    %c0_i32 = arith.constant 0 : i32
    %c0_i32_0 = arith.constant 0 : i32
    return %arg0, %c0_i32 : i32, i32
  }
}

</mosaic_0001>

<bundles_post_ra>
// kernel: tpu_custom_call.1
= control target key start
LH: loop header
LB: loop body
LE: loop exit
PB: predicated region body
PF: predicated region fallthrough
CT: control target
= control target key end

     0   :  { %10 = vsyncpa [#allocation3], 0  ;;  %s578_s0 = inlined_call_operand.hbm [shape: f32[16,32], index: 0, kind: input, shape index: {}]   ;;  %s579_s1 = inlined_call_operand.hbm [shape: f32[3,32,32], index: 1, kind: input, shape index: {}]   ;;  %s580_s2 = inlined_call_operand.hbm [shape: bf16[16,32], index: 2, kind: output, shape index: {0}]   ;;  %s581_s3 = inlined_call_operand.hbm [shape: bf16[16,32], index: 3, kind: output, shape index: {1}]   ;;  %s582_s4 = inlined_call_operand.hbm [shape: bf16[16,32], index: 4, kind: output, shape index: {2}]  }
   0x1   :  { %11 = vsyncpa [#allocation6], 0 }
   0x2   :  { %12 = vsyncpa [#allocation4], 0 }
   0x3   :  { %13 = vsyncpa [#allocation9], 0  ;;  %s454_s15 = smov [#allocation2]   ;;  %s336_s19 = scalar_lea.hbm %s578_s0, 256 }
   0x4   :  { %s19_s16 = sshll.u32 %s454_s15, 4  ;;  %p337_p0 = scmp.ne.s32.totalorder %s578_s0, %s336_s19  ;;  %s20_s16 = int_to_ptr.vmem [resolvable:$true] %s19_s16 }
   0x5   :  { %p340_p1 = scmp.lt.u32.totalorder %s336_s19, %s578_s0 }
   0x7   :  { %p342_p2 = pnand %p340_p1, %p337_p0 }
   0x9   :  { %345 = shalt.err (!%p342_p2)
}
   0xa   :  { %s346_s24 = scalar_lea.vmem %s20_s16, 256  ;;  %p351_p4 = scmp.lt.s32.totalorder %s20_s16, %s20_s16 }
   0xb   :  { %p347_p3 = scmp.ne.s32.totalorder %s20_s16, %s346_s24  ;;  %p352_p5 = scmp.lt.s32.totalorder %s346_s24, %s346_s24 }
   0xd   :  { %p353_p6 = por %p352_p5, %p351_p4 }
   0xf   :  { %p354_p7 = pnand %p353_p6, %p347_p3 }
  0x11   :  { %357 = shalt.err (!%p354_p7)
}
  0x12   :  { %s455_s25 = smov 128   ;;  %s456_s26 = smov 8  }
  0x13   :  { %25 = dma.hbm_to_vmem [thread:$0]  %s578_s0, 256, %s20_s16, [#allocation3], %s455_s25, %s455_s25, %s456_s26  }
  0x14   :  { %s457_s29 = smov [#allocation5]   ;;  %s358_s7 = scalar_lea.hbm %s579_s1, 1536 }
  0x15   :  { %s31_s30 = sshll.u32 %s457_s29, 4  ;;  %p359_p8 = scmp.ne.s32.totalorder %s579_s1, %s358_s7  ;;  %s32_s30 = int_to_ptr.vmem [resolvable:$true] %s31_s30 }
  0x16   :  { %p362_p9 = scmp.lt.u32.totalorder %s358_s7, %s579_s1 }
  0x18   :  { %p364_p10 = pnand %p362_p9, %p359_p8 }
  0x1a   :  { %367 = shalt.err (!%p364_p10)
}
  0x1b   :  { %s368_s12 = scalar_lea.vmem %s32_s30, 1536  ;;  %p373_p12 = scmp.lt.s32.totalorder %s32_s30, %s32_s30 }
  0x1c   :  { %p369_p11 = scmp.ne.s32.totalorder %s32_s30, %s368_s12  ;;  %p374_p13 = scmp.lt.s32.totalorder %s368_s12, %s368_s12 }
  0x1e   :  { %p375_p0 = por %p374_p13, %p373_p12 }
  0x20   :  { %p376_p1 = pnand %p375_p0, %p369_p11 }
  0x22   :  { %379 = shalt.err (!%p376_p1)
}
  0x23   :  { %37 = dma.hbm_to_vmem [thread:$0]  %s579_s1, 1536, %s32_s30, [#allocation6], %s455_s25, %s455_s25, %s456_s26  }
  0x24   :  { %446 = dma.done.wait [#allocation3], 256  }
  0x25   :  { %447 = vsyncadd [#allocation3], 4294967040 }
  0x26   :  { %448 = dma.done.wait [#allocation6], 1536  }
  0x27   :  { %449 = vsyncadd [#allocation6], 4294965760  ;;  %v458_v0 = vmov 0.0   ;;  %vm459_vm0 = vmmov 0   ;;  %v48_v1 = vld [vmem:[#allocation5] sm:$0xff]  ;;  %v49_v2 = vld [vmem:[#allocation5 + $0x8] sm:$0xff] }
  0x28   :  { %301 = vmatprep.subr.bf16.mxu0 %v458_v0  ;;  %309 = vmatprep.subr.bf16.mxu1 %v458_v0  ;;  %v50_v3 = vld [vmem:[#allocation5 + $0x10] sm:$0xff]  ;;  %v52_v4 = vpack.c.bf16 %v49_v2, %v48_v1  ;;  %v51_v5 = vld [vmem:[#allocation5 + $0x18] sm:$0xff]  ;;  %v55_v6 = vld [vmem:[#allocation5 + $0x20] sm:$0xff]  ;;  %vm68_vm1 = vcmask 261120   ;;  %s460_s1 = smov [#allocation8]   ;;  %vm205_vm2 = vcmask 257024  }
  0x29   :  { %305 = vmatprep.mubr.msk.bf16.mxu0 %vm459_vm0, %v458_v0  ;;  %313 = vmatprep.mubr.msk.bf16.mxu1 %vm459_vm0, %v458_v0  ;;  %v56_v7 = vld [vmem:[#allocation5 + $0x28] sm:$0xff]  ;;  %v45_v9 = vld [vmem:[#allocation2] sm:$0xff]  ;;  %v53_v10 = vpack.c.bf16 %v51_v5, %v50_v3  ;;  %v46_v11 = vld [vmem:[#allocation2 + $0x8] sm:$0xff]  ;;  %s245_s14 = sshll.u32 %s460_s1, 4  ;;  %s461_s15 = smov [#allocation7]   ;;  %s246_s14 = int_to_ptr.vmem [resolvable:$true] %s245_s14 }
  0x2a   :  { %v59_v8 = vpack.c.bf16 %v56_v7, %v55_v6  ;;  %302 = vmatpush3.bf16.msra.mxu0 %v52_v4  ;;  %v57_v12 = vld [vmem:[#allocation5 + $0x30] sm:$0xff]  ;;  %v58_v13 = vld [vmem:[#allocation5 + $0x38] sm:$0xff]  ;;  %v62_v14 = vld [vmem:[#allocation5 + $0x40] sm:$0xff]  ;;  %v47_v17 = vpack.c.bf16 %v46_v11, %v45_v9  ;;  %s233_s16 = sshll.u32 %s461_s15, 4  ;;  %s462_s17 = smov [#allocation10]   ;;  %s519_s16 = int_to_ptr.vmem [resolvable:$true] %s233_s16 }
  0x2b   :  { %303 = vmatprep.subr.bf16.mxu0 %v458_v0  ;;  %v63_v15 = vld [vmem:[#allocation5 + $0x48] sm:$0xff]  ;;  %v60_v16 = vpack.c.bf16 %v58_v13, %v57_v12  ;;  %v64_v19 = vld [vmem:[#allocation5 + $0x50] sm:$0xff]  ;;  %v65_v20 = vld [vmem:[#allocation5 + $0x58] sm:$0xff]  ;;  %s522_s18 = sshll.u32 %s462_s17, 4  ;;  %s380_s19 = scalar_lea.vmem %s246_s14, 128  ;;  %s258_s18 = int_to_ptr.vmem [resolvable:$true] %s522_s18 }
  0x2c   :  { %310 = vmatpush3.bf16.msra.mxu1 %v59_v8  ;;  %v66_v18 = vpack.c.bf16 %v63_v15, %v62_v14  ;;  %v67_v21 = vpack.c.bf16 %v65_v20, %v64_v19  ;;  %p381_p2 = scmp.ne.s32.totalorder %s246_s14, %s380_s19  ;;  %p385_p3 = scmp.lt.s32.totalorder %s246_s14, %s246_s14 }
  0x2d   :  { %311 = vmatprep.subr.bf16.mxu1 %v458_v0  ;;  %p386_p4 = scmp.lt.s32.totalorder %s380_s19, %s380_s19 }
  0x2e   :  { %304 = vmatpush3.bf16.msra.mxu0 %v53_v10 }
  0x2f   :  { %317 = vmatprep.subr.bf16.mxu0 %v458_v0  ;;  %p387_p5 = por %p386_p4, %p385_p3 }
  0x30   :  { %312 = vmatpush3.bf16.msra.mxu1 %v60_v16 }
  0x31   :  { %306 = vmatmul.mubr.msk.bf16.vlgmr.msra.gmra.mrb[0].mxu0 %vm68_vm1, %v47_v17  ;;  %p388_p6 = pnand %p387_p5, %p381_p2 }
  0x32   :  { %318 = vmatpush3.bf16.msra.mxu0 %v66_v18  ;;  %321 = vmatprep.mubr.msk.bf16.mxu0 %vm459_vm0, %v458_v0 }
  0x33   :  { %314 = vmatmul.mubr.msk.bf16.vlgmr.msra.gmra.mrb[0].mxu1 %vm68_vm1, %v47_v17  ;;  %319 = vmatprep.subr.bf16.mxu0 %v458_v0 }
  0x36   :  { %320 = vmatpush3.bf16.msra.mxu0 %v67_v21 }
  0x39   :  { %322 = vmatmul.mubr.msk.bf16.vlgmr.msra.gmra.mrb[4].mxu0 %vm68_vm1, %v47_v17 }
 0x104   :  { %v106_v22 = vpop.f32.mrb[0].mxu0 }
 0x105   :  { %v113_v23 = vmul.f32 0.17677669, %v106_v22  ;;  %v307_v24 = vpop.f32.mrb[1].mxu0 }
 0x106   :  { %v149_v25 = vpop.f32.mrb[0].mxu1  ;;  %v109_v26 = vpop.f32.mrb[2].mxu0 }
 0x107   :  { %v288_v27 = vpack.c.bf16 %v149_v25, %v149_v25  ;;  %v315_v28 = vpop.f32.mrb[1].mxu1  ;;  %v286_v29 = vpack.c.bf16 %v113_v23, %v113_v23  ;;  %v114_v30 = vmul.f32 0.17677669, %v109_v26  ;;  %v308_v31 = vpop.f32.mrb[3].mxu0 }
 0x108   :  { %v152_v32 = vpop.f32.mrb[2].mxu1 }
 0x109   :  { %216 = vst.msk [vmem:[#allocation8] sm:$0xf] %vm205_vm2, %v288_v27  ;;  %v289_v33 = vpack.c.bf16 %v152_v32, %v152_v32  ;;  %v316_v34 = vpop.f32.mrb[3].mxu1  ;;  %206 = vst.msk [vmem:[#allocation7] sm:$0xf] %vm205_vm2, %v286_v29  ;;  %v287_v35 = vpack.c.bf16 %v114_v30, %v114_v30 }
 0x10b   :  { %217 = vst.msk [vmem:[#allocation8 + $0x4] sm:$0xf] %vm205_vm2, %v289_v33  ;;  %207 = vst.msk [vmem:[#allocation7 + $0x4] sm:$0xf] %vm205_vm2, %v287_v35 }
 0x10c   :  { %391 = shalt.err (!%p388_p6)
}
 0x10d   :  { %s392_s22 = scalar_lea.hbm %s581_s3, 128 }
 0x10e   :  { %p393_p7 = scmp.ne.s32.totalorder %s581_s3, %s392_s22  ;;  %p396_p8 = scmp.lt.u32.totalorder %s392_s22, %s581_s3 }
 0x110   :  { %p398_p9 = pnand %p396_p8, %p393_p7 }
 0x112   :  { %401 = shalt.err (!%p398_p9)
}
 0x113   :  { %s463_s27 = smov 64   ;;  %s464_s28 = smov 4   ;;  %v190_v36 = vpop.f32.mrb[4].mxu0 }
 0x114   :  { %251 = dma.vmem_to_hbm [thread:$0]  %s246_s14, 128, %s581_s3, [#allocation9], %s463_s27, %s463_s27, %s464_s28  }
 0x115   :  { %s402_s5 = scalar_lea.vmem %s519_s16, 128  ;;  %p407_p11 = scmp.lt.s32.totalorder %s519_s16, %s519_s16 }
 0x116   :  { %p403_p10 = scmp.ne.s32.totalorder %s519_s16, %s402_s5  ;;  %p408_p12 = scmp.lt.s32.totalorder %s402_s5, %s402_s5 }
 0x118   :  { %p409_p13 = por %p408_p12, %p407_p11 }
 0x11a   :  { %p410_p0 = pnand %p409_p13, %p403_p10 }
 0x11c   :  { %413 = shalt.err (!%p410_p0)
}
 0x11d   :  { %s414_s8 = scalar_lea.hbm %s580_s2, 128 }
 0x11e   :  { %p415_p1 = scmp.ne.s32.totalorder %s580_s2, %s414_s8  ;;  %p418_p2 = scmp.lt.u32.totalorder %s414_s8, %s580_s2 }
 0x120   :  { %p420_p3 = pnand %p418_p2, %p415_p1 }
 0x122   :  { %423 = shalt.err (!%p420_p3)
}
 0x123   :  { %239 = dma.vmem_to_hbm [thread:$0]  %s519_s16, 128, %s580_s2, [#allocation4], %s463_s27, %s463_s27, %s464_s28   ;;  %v290_v37 = vpack.c.bf16 %v190_v36, %v190_v36  ;;  %v323_v38 = vpop.f32.mrb[5].mxu0 }
 0x124   :  { %v193_v39 = vpop.f32.mrb[6].mxu0  ;;  %s424_s13 = scalar_lea.vmem %s258_s18, 128  ;;  %p429_p5 = scmp.lt.s32.totalorder %s258_s18, %s258_s18 }
 0x125   :  { %226 = vst.msk [vmem:[#allocation10] sm:$0xf] %vm205_vm2, %v290_v37  ;;  %v291_v40 = vpack.c.bf16 %v193_v39, %v193_v39  ;;  %v324_v41 = vpop.f32.mrb[7].mxu0  ;;  %p425_p4 = scmp.ne.s32.totalorder %s258_s18, %s424_s13  ;;  %p430_p6 = scmp.lt.s32.totalorder %s424_s13, %s424_s13 }
 0x127   :  { %227 = vst.msk [vmem:[#allocation10 + $0x4] sm:$0xf] %vm205_vm2, %v291_v40  ;;  %p431_p7 = por %p430_p6, %p429_p5 }
 0x129   :  { %p432_p8 = pnand %p431_p7, %p425_p4 }
 0x12b   :  { %435 = shalt.err (!%p432_p8)
}
 0x12c   :  { %s436_s2 = scalar_lea.hbm %s582_s4, 128 }
 0x12d   :  { %p437_p9 = scmp.ne.s32.totalorder %s582_s4, %s436_s2  ;;  %p440_p10 = scmp.lt.u32.totalorder %s436_s2, %s582_s4 }
 0x12f   :  { %p442_p11 = pnand %p440_p10, %p437_p9 }
 0x131   :  { %445 = shalt.err (!%p442_p11)
}
 0x132   :  { %263 = dma.vmem_to_hbm [thread:$0]  %s258_s18, 128, %s582_s4, [#allocation9], %s463_s27, %s463_s27, %s464_s28  }
 0x133   :  { %450 = dma.done.wait [#allocation4], 128  }
 0x134   :  { %451 = vsyncadd [#allocation4], 4294967168 }
 0x135   :  { %452 = dma.done.wait [#allocation9], 256  }
 0x136   :  { %453 = vsyncadd [#allocation9], 4294967040 }
 0x137   :  { %273 = vsyncpa [#allocation3], 1 }
 0x138   :  { %274 = vsyncpa [#allocation6], 1 }
 0x139   :  { %275 = vsyncpa [#allocation4], 1 }
 0x13a   :  { %276 = vsyncpa [#allocation9], 1 }

</bundles_post_ra>
